<compile_context>
chip_gen: v7x
topology: tpu7x:2x2x1
jax: 0.10.0
libtpu: 0.0.40
codegen_flags: <defaults>
</compile_context>

<pallas_src>
import math

import jax
import jax.numpy as jnp
from jax.experimental import pallas as pl
from jax.experimental.pallas import tpu as pltpu


def make_positional_encoding(d_model: int, max_len: int = 5000,
                             dtype=jnp.float32) -> jnp.ndarray:
    """Deterministic PE buffer, identical to the PyTorch __init__ math."""
    position = jnp.arange(0, max_len, dtype=jnp.float32)[:, None]            # (max_len, 1)
    div_term = jnp.exp(
        jnp.arange(0, d_model, 2, dtype=jnp.float32) * (-math.log(10000.0) / d_model)
    )                                                                         # (d_model/2,)
    pe = jnp.zeros((max_len, d_model), dtype=jnp.float32)
    pe = pe.at[:, 0::2].set(jnp.sin(position * div_term))
    pe = pe.at[:, 1::2].set(jnp.cos(position * div_term))
    return pe.astype(dtype)                                                   # (max_len, d_model)


def _add_pe_kernel(x_ref, pe_ref, o_ref):
    # x_ref: (1, TS, D) block; pe_ref: (TS, D) block -> broadcast add over batch.
    o_ref[...] = x_ref[...] + pe_ref[...]


def _pick_seq_tile(S: int, D: int, itemsize: int,
                   vmem_budget_bytes: int = 24 << 20) -> int:
    """Pick a sequence-tile size (rows) that keeps all in-flight buffers
    (2x x, 2x out, 2x pe double-buffered copies) under the scoped-VMEM budget
    of the smallest target (v7x: 32 MiB default scoped / 64 MiB physical)."""
    bytes_per_row = max(1, D * itemsize)
    max_rows = max(1, vmem_budget_bytes // (6 * bytes_per_row))
    ts = min(S, 512, max_rows)
    ts = max(8, (ts // 8) * 8)   # keep sublane-aligned (multiple of 8)
    return ts


def positional_encoding_forward(x: jnp.ndarray, pe: jnp.ndarray,
                                *, seq_tile: int | None = None,
                                donate_x: bool = False) -> jnp.ndarray:
    """x: (B, S, D); pe: (max_len, D). Returns x + pe[:S] (broadcast over B)."""
    B, S, D = x.shape
    max_len, d_model = pe.shape
    assert d_model == D, f"pe d_model {d_model} != x d_model {D}"
    assert S <= max_len, f"sequence length {S} exceeds PE max_len {max_len}"

    # Do the add in the activation dtype (single tiny one-time cast of the table).
    if pe.dtype != x.dtype:
        pe = pe.astype(x.dtype)

    ts = seq_tile if seq_tile is not None else _pick_seq_tile(S, D, x.dtype.itemsize)
    n_s = pl.cdiv(S, ts)

    # Grid: sequence tiles OUTER, batch INNER -> PE block index only changes on
    # the outer axis, so the PE tile stays resident across the batch loop.
    kwargs = {}
    if donate_x:
        kwargs["input_output_aliases"] = {0: 0}

    return pl.pallas_call(
        _add_pe_kernel,
        out_shape=jax.ShapeDtypeStruct((B, S, D), x.dtype),
        grid_spec=pltpu.PrefetchScalarGridSpec(
            num_scalar_prefetch=0,
            grid=(n_s, B),
            in_specs=[
                pl.BlockSpec((1, ts, D), lambda s, b: (b, s, 0)),   # x tile
                pl.BlockSpec((ts, D), lambda s, b: (s, 0)),         # PE rows (no wrapper slice)
            ],
            out_specs=pl.BlockSpec((1, ts, D), lambda s, b: (b, s, 0)),
        ),
        compiler_params=pltpu.CompilerParams(
            dimension_semantics=("parallel", "parallel"),
        ),
        **kwargs,
    )(x, pe)


if __name__ == "__main__":
    # Small demo shapes: D = 128 keeps the last dim lane-dense (multiple of 128);
    # S = 16 with seq_tile = 8 exercises multiple sequence tiles.
    B, S, D = 2, 16, 128
    max_len = 64  # small max_len for the synthetic test (module default is 5000)

    key = jax.random.PRNGKey(0)
    x = jax.random.normal(key, (B, S, D), dtype=jnp.float32)

    pe = make_positional_encoding(D, max_len=max_len, dtype=x.dtype)

    out = positional_encoding_forward(x, pe, seq_tile=8)
    out = jax.block_until_ready(out)

    # Reference check in plain JAX (same semantics as PyTorch forward).
    ref = x + pe[None, :S, :]
    assert out.shape == (B, S, D)
    assert jnp.allclose(out, ref, atol=1e-6), "Pallas output mismatch vs reference"

    # Also exercise the auto tile-size path (full-S tile here).
    out2 = jax.block_until_ready(positional_encoding_forward(x, pe))
    assert jnp.allclose(out2, ref, atol=1e-6), "Pallas output mismatch (auto tile)"

    print("KERNEL_OK")
</pallas_src>

<mosaic_0001>
module attributes {stable_mosaic.version = 11 : i64} {
  func.func @_add_pe_kernel(%arg0: i32, %arg1: i32, %arg2: memref<1x8x128xf32, #tpu.memory_space<vmem>>, %arg3: memref<8x128xf32, #tpu.memory_space<vmem>>, %arg4: memref<1x8x128xf32, #tpu.memory_space<vmem>>) attributes {dimension_semantics = [#tpu.dimension_semantics<parallel>, #tpu.dimension_semantics<parallel>], iteration_bounds = array<i64: 2, 2>, scalar_prefetch = 0 : i64, scratch_operands = 0 : i64, tpu.core_type = #tpu.core_type<tc>, window_params = [{transform_indices = @transform_0, window_bounds = array<i64: 1, 8, 128>}, {transform_indices = @transform_1, window_bounds = array<i64: 8, 128>}, {transform_indices = @transform_2, window_bounds = array<i64: 1, 8, 128>}]} {
    %c0 = arith.constant 0 : index
    %c0_0 = arith.constant 0 : index
    %c0_1 = arith.constant 0 : index
    %0 = vector.load %arg2[%c0, %c0_0, %c0_1] : memref<1x8x128xf32, #tpu.memory_space<vmem>>, vector<1x8x128xf32>
    %c0_2 = arith.constant 0 : index
    %c0_3 = arith.constant 0 : index
    %1 = vector.load %arg3[%c0_2, %c0_3] : memref<8x128xf32, #tpu.memory_space<vmem>>, vector<8x128xf32>
    %2 = vector.shape_cast %1 : vector<8x128xf32> to vector<1x8x128xf32>
    %3 = arith.addf %0, %2 : vector<1x8x128xf32>
    %c0_4 = arith.constant 0 : index
    %c0_5 = arith.constant 0 : index
    %c0_6 = arith.constant 0 : index
    %4 = vector.load %arg4[%c0_4, %c0_5, %c0_6] : memref<1x8x128xf32, #tpu.memory_space<vmem>>, vector<1x8x128xf32>
    tpu.vector_store %arg4[%c0_4, %c0_5, %c0_6], %3 {strides = array<i32>} : memref<1x8x128xf32, #tpu.memory_space<vmem>>, vector<1x8x128xf32>,
    return
  }
  func.func @transform_0(%arg0: i32, %arg1: i32) -> (i32, i32, i32) {
    %c0_i32 = arith.constant 0 : i32
    %c0_i32_0 = arith.constant 0 : i32
    return %arg1, %arg0, %c0_i32 : i32, i32, i32
  }
  func.func @transform_1(%arg0: i32, %arg1: i32) -> (i32, i32) {
    %c0_i32 = arith.constant 0 : i32
    %c0_i32_0 = arith.constant 0 : i32
    return %arg0, %c0_i32 : i32, i32
  }
  func.func @transform_2(%arg0: i32, %arg1: i32) -> (i32, i32, i32) {
    %c0_i32 = arith.constant 0 : i32
    %c0_i32_0 = arith.constant 0 : i32
    return %arg1, %arg0, %c0_i32 : i32, i32, i32
  }
}

</mosaic_0001>

<bundles_post_ra>
// kernel: tpu_custom_call.1
= control target key start
LH: loop header
LB: loop body
LE: loop exit
PB: predicated region body
PF: predicated region fallthrough
CT: control target
= control target key end

     0   :  { %s974_s0 = inlined_call_operand.hbm [shape: f32[2,16,128], index: 0, kind: input, shape index: {}]   ;;  %s975_s1 = inlined_call_operand.hbm [shape: f32[64,128], index: 1, kind: input, shape index: {}]   ;;  %s976_s2 = inlined_call_operand.hbm [shape: f32[2,16,128], index: 2, kind: output, shape index: {}]  }
   0x1   :  { %986 = sst [smem:[#allocation14_spill]] %s976_s2 }
   0x2   :  { %7 = vsyncpa [#allocation3], 0 }
   0x3   :  { %9 = vsyncpa [#allocation3 + $0x1], 0 }
   0x4   :  { %10 = vsyncpa [#allocation6], 0 }
   0x5   :  { %12 = vsyncpa [#allocation6 + $0x1], 0 }
   0x6   :  { %13 = vsyncpa [#allocation4], 0 }
   0x7   :  { %15 = vsyncpa [#allocation4 + $0x1], 0  ;;  %s673_s9 = smov 0   ;;  %s675_s10 = smov 0  }
   0x8   :  { %s677_s11 = smov 0   ;;  %s679_s12 = smov 0  }
   0x9   :  { %s681_s13 = smov 0   ;;  %s683_s14 = smov 0  }
   0xa   :  { %s685_s15 = smov 0   ;;  %s687_s16 = smov 0  }
   0xb   :  { %s689_s17 = smov 0   ;;  %s691_s18 = smov 0  }
   0xc   :  { %s693_s19 = smov 0  }
   0xd LB: > { %987 = sst [smem:[#allocation11_spill]] %s625_s12  ;;  %s342_s20 = sadd.s32 4294967295, %s653_s19   ;;  %s653_s19 = sphi %s693_s19, %s21_s19   ;;  %s649_s18 = sphi %s691_s18, %s1021_s18   ;;  %s645_s17 = sphi %s689_s17, %s1020_s17   ;;  %s641_s16 = sphi %s687_s16, %s1019_s16   ;;  %s637_s15 = sphi %s685_s15, %s1018_s15   ;;  %s633_s14 = sphi %s683_s14, %s1017_s14   ;;  %s629_s13 = sphi %s681_s13, %s1016_s13   ;;  %s625_s12 = sphi %s679_s12, %s1015_s12   ;;  %s621_s11 = sphi %s677_s11, %s1014_s11   ;;  %s617_s10 = sphi %s675_s10, %s1013_s10   ;;  %s613_s9 = sphi %s673_s9, %s1012_s9  }
   0xe   : > { %s343_s21 = sadd.s32 4294967294, %s653_s19   ;;  %s30_s22 = sadd.s32 1, %s645_s17 }
   0xf   : > { %s33_s23 = sadd.s32 1, %s649_s18  ;;  %p31_p0 = scmp.ge.s32.totalorder %s30_s22, 2 }
  0x10   : > { %s42_s24 = sadd.s32 1, %s633_s14  ;;  %p49_p1 = scmp.ne.s32.totalorder %s633_s14, %s629_s13 }
  0x11   : > { %p981_p2 = scmp.eq.s32.totalorder %s653_s19, 0  ;;  %s1023_s22 = smov (%p31_p0, %s30_s22), 0 }
  0x12   : > { %988 = sst [smem:[#allocation12_spill]] %s1023_s22  ;;  %s1025_s23 = smov (!%p31_p0, %s33_s23), %s649_s18 }
  0x13   : > { %s37_s25 = ssub.s32 %s645_s17, %s1023_s22  ;;  %p743_p3 = por %p981_p2, %p49_p1 }
  0x14   : > { %p35_p4 = scmp.ge.s32.totalorder %s1025_s23, 2  ;;  %p55_p5 = scmp.ne.s32.totalorder %s629_s13, %s625_s12 }
  0x15   : > { %p749_p6 = scmp.eq.s32.totalorder %s342_s20, 0  ;;  %p107_p7 = scmp.eq.s32.totalorder %s342_s20, 3 }
  0x16   : > { %s1027_s23 = smov (%p35_p4, %s1025_s23), 0  ;;  %p113_p10 = scmp.eq.s32.totalorder %s343_s21, 3 }
  0x17   : > { %991 = sst [smem:[#allocation13_spill]] %s1027_s23  ;;  %p757_p8 = por %p749_p6, %p55_p5 }
  0x18   : > { %p761_p9 = por %p107_p7, %p49_p1  ;;  %s767_s30 = ssub.s32 %s649_s18, %s1027_s23 }
  0x19   : > { %s992_s28 = scalar_select %p757_p8, 1, 0 }
  0x1a   : > { %s993_s29 = scalar_select %p761_p9, 1, 0 }
  0x1b   : > { %s39_s3 = sor.u32 %s767_s30, %s37_s25  ;;  %p771_p13 = por %p113_p10, %p55_p5 }
  0x1c   : > { %p40_p12 = scmp.eq.s32.totalorder %s39_s3, 0  ;;  %p982_p0 = scmp.lt.s32.totalorder %s653_s19, 4 }
  0x1d   : > { %s994_s4 = scalar_select %p771_p13, 1, 0 }
  0x1e   : > { %s777_s5 = scalar_select %p40_p12, %s633_s14, %s42_s24  }
  0x1f   : > { %s133_s6 = sand.u32 1, %s633_s14   ;;  %s347_s7 = sshll.u32 %s645_s17, 1 }
  0x20   : > { %s346_s8 = sshll.u32 %s133_s6, 3  ;;  %s142_s20 = sadd.s32 %s649_s18, %s347_s7 }
  0x21   : > { %s348_s23 = sshll.u32 %s142_s20, 7  ;;  %s137_s21 = scalar_lea.vmem [#allocation2], %s346_s8 }
  0x22   : > { %s146_s22 = sshll.u32 %s137_s21, 4  ;;  %s785_s2 = scalar_lea.hbm %s974_s0, %s348_s23  ;;  %s787_s22 = int_to_ptr.vmem [resolvable:$true] %s146_s22 }
  0x23   : > { %p793_p1 = pnand %p982_p0, %p743_p3  ;;  %s134_s3 = scalar_lea.sflag [#allocation3], %s133_s6 }
  0x24   : > { %s467_s12 = scalar_lea.hbm %s785_s2, 128  ;;  %s472_s7 = scalar_lea.hbm %s974_s0, 512 }
  0x25   : > { %p468_p7 = scmp.ne.s32.totalorder %s785_s2, %s467_s12  ;;  %p469_p10 = pneg %p793_p1 }
  0x26   : > { %p473_p3 = scmp.lt.u32.totalorder %s785_s2, %s974_s0  ;;  %p474_p0 = scmp.lt.u32.totalorder %s472_s7, %s467_s12 }
  0x27   : > { %p470_p12 = pnand %p469_p10, %p468_p7  ;;  %p476_p4 = scmp.lt.u32.totalorder %s467_s12, %s785_s2 }
  0x28   : > { %p475_p11 = por %p474_p0, %p473_p3 }
  0x29   : > { %p471_p2 = pneg %p470_p12 }
  0x2a   : > { %p477_p5 = por %p476_p4, %p475_p11 }
  0x2c   : > { %p478_p13 = pnand %p477_p5, %p471_p2 }
  0x2e   : > { %481 = shalt.err (!%p478_p13)
}
  0x2f   : > { %s482_s6 = scalar_lea.vmem %s787_s22, 128  ;;  %s655_s21 = smov [#allocation2]  }
  0x30   : > { %p483_p7 = scmp.ne.s32.totalorder %s787_s22, %s482_s6  ;;  %s487_s25 = sshll.u32 %s655_s21, 4  ;;  %s488_s25 = int_to_ptr.vmem [resolvable:$false] %s487_s25 }
  0x31   : > { %s489_s23 = scalar_lea.vmem %s488_s25, 256  ;;  %p490_p8 = scmp.lt.s32.totalorder %s787_s22, %s488_s25 }
  0x32   : > { %p485_p12 = pnand %p483_p7, %p469_p10  ;;  %p491_p0 = scmp.lt.s32.totalorder %s489_s23, %s482_s6 }
  0x34   : > { %p486_p9 = pneg %p485_p12  ;;  %p492_p3 = por %p491_p0, %p490_p8 }
  0x36   : > { %p493_p11 = pnand %p492_p3, %p486_p9 }
  0x38   : > { %496 = shalt.err (!%p493_p11)
}
  0x39   : > { %369 = dma.hbm_to_vmem [thread:$0]  (!%p793_p1), %s785_s2, 128, %s787_s22, %s134_s3  }
  0x3a   : > { %p996_p2 = scmp.lt.s32.totalorder %s653_s19, 5  ;;  %p997_p8 = scmp.ge.s32.totalorder %s653_s19, 1 }
  0x3b   : > { %s68_s12 = sadd.s32 1, %s621_s11  ;;  %p999_p13 = scmp.eq.s32.totalorder %s767_s30, 0 }
  0x3c   : > { %p828_p9 = pnand %p997_p8, %p996_p2  ;;  %p75_p4 = scmp.ne.s32.totalorder %s621_s11, %s617_s10 }
  0x3d   : > { %s836_s26 = scalar_select %p999_p13, %s621_s11, %s68_s12  }
  0x3e   : > { %p81_p5 = scmp.ne.s32.totalorder %s617_s10, %s613_s9  ;;  %s153_s7 = sand.u32 1, %s621_s11  }
  0x3f   : > { %s350_s8 = sshll.u32 %s649_s18, 7  ;;  %p1000_p10 = scmp.eq.s32.totalorder %s653_s19, 0 }
  0x40   : > { %p848_p12 = por %p81_p5, %p749_p6  ;;  %s349_s2 = sshll.u32 %s153_s7, 3 }
  0x41   : > { %p77_p7 = por %p75_p4, %p1000_p10  ;;  %s855_s6 = scalar_lea.hbm %s975_s1, %s350_s8 }
  0x42   : > { %s1001_s20 = scalar_select %p848_p12, 1, 0 }
  0x43   : > { %s157_s9 = scalar_lea.vmem [#allocation5], %s349_s2  ;;  %p1002_p1 = scmp.lt.s32.totalorder %s653_s19, 4 }
  0x44   : > { %s164_s30 = sshll.u32 %s157_s9, 4  ;;  %s154_s27 = scalar_lea.sflag [#allocation6], %s153_s7  ;;  %s863_s30 = int_to_ptr.vmem [resolvable:$true] %s164_s30 }
  0x45   : > { %p859_p0 = pnand %p1002_p1, %p77_p7  ;;  %s497_s25 = scalar_lea.hbm %s855_s6, 128 }
  0x46   : > { %p498_p6 = scmp.ne.s32.totalorder %s855_s6, %s497_s25  ;;  %s502_s8 = scalar_lea.hbm %s975_s1, 1024 }
  0x47   : > { %p499_p3 = pneg %p859_p0  ;;  %p503_p8 = scmp.lt.u32.totalorder %s855_s6, %s975_s1 }
  0x48   : > { %p504_p13 = scmp.lt.u32.totalorder %s502_s8, %s497_s25  ;;  %p506_p5 = scmp.lt.u32.totalorder %s497_s25, %s855_s6 }
  0x49   : > { %p500_p11 = pnand %p499_p3, %p498_p6 }
  0x4a   : > { %p505_p4 = por %p504_p13, %p503_p8 }
  0x4b   : > { %p501_p2 = pneg %p500_p11 }
  0x4c   : > { %p507_p10 = por %p506_p5, %p505_p4 }
  0x4e   : > { %p508_p7 = pnand %p507_p10, %p501_p2 }
  0x50   : > { %511 = shalt.err (!%p508_p7)
}
  0x51   : > { %s512_s7 = scalar_lea.vmem %s863_s30, 128  ;;  %s656_s3 = smov [#allocation5]  }
  0x52   : > { %p513_p1 = scmp.ne.s32.totalorder %s863_s30, %s512_s7  ;;  %s517_s9 = sshll.u32 %s656_s3, 4  ;;  %s518_s9 = int_to_ptr.vmem [resolvable:$false] %s517_s9 }
  0x53   : > { %s519_s23 = scalar_lea.vmem %s518_s9, 256  ;;  %p520_p12 = scmp.lt.s32.totalorder %s863_s30, %s518_s9 }
  0x54   : > { %p515_p6 = pnand %p513_p1, %p499_p3  ;;  %p521_p8 = scmp.lt.s32.totalorder %s519_s23, %s512_s7 }
  0x56   : > { %p516_p11 = pneg %p515_p6  ;;  %p522_p13 = por %p521_p8, %p520_p12 }
  0x58   : > { %p523_p4 = pnand %p522_p13, %p516_p11 }
  0x5a   : > { %526 = shalt.err (!%p523_p4)
}
  0x5b   : > { %372 = dma.hbm_to_vmem [thread:$0]  (!%p859_p0), %s855_s6, 128, %s863_s30, %s154_s27  }
  0x5c   : > { %173 = sbr.rel (%p828_p9) target bundleno = 132 (0x84), region = 28  ;;  %s893_s25 = sand.u32 (!%p828_p9), 1, %s629_s13  }
  0x5d   : > { %s352_s12 = sshll.u32 (!%p828_p9), %s893_s25, 3  ;;  %s176_s8 = scalar_lea.sflag (!%p828_p9), [#allocation3], %s893_s25 }
  0x5e   : > { %s179_s2 = scalar_lea.vmem (!%p828_p9), [#allocation2], %s352_s12  ;;  %p1004_p12 = scmp.ne.s32.totalorder (!%p828_p9), %s992_s28, 0 }
  0x63   : > { %600 = dma.done.wait (%p1004_p12), %s176_s8, 128  }
  0x64   : > { %602 = vsyncadd (%p1004_p12), %s176_s8, 4294967168  ;;  %s184_s6 = sand.u32 1, %s617_s10   ;;  %p1005_p9 = scmp.ne.s32.totalorder %s1001_s20, 0 }
  0x65   : > { %s353_s30 = sshll.u32 %s184_s6, 3  ;;  %s185_s24 = scalar_lea.sflag [#allocation6], %s184_s6 }
  0x66   : > { %s188_s21 = scalar_lea.vmem [#allocation5], %s353_s30 }
  0x67   : > { %604 = dma.done.wait (%p1005_p9), %s185_s24, 128  }
  0x68   : > { %606 = vsyncadd (%p1005_p9), %s185_s24, 4294967168  ;;  %s356_s27 = sshll.u32 %s637_s15, 1  ;;  %s213_s7 = scalar_lea.vmem [#allocation7], %s352_s12  ;;  %v214_v0 = vld [vmem:[%s179_s2] sm:$0xff]  ;;  %v215_v1 = vld [vmem:[%s188_s21] sm:$0xff] }
  0x69   : > { %s230_s22 = sadd.s32 %s641_s16, %s356_s27  ;;  %s234_s28 = sshll.u32 %s213_s7, 4  ;;  %v216_v2 = vadd.f32 %v215_v1, %v214_v0  ;;  %s908_s28 = int_to_ptr.vmem [resolvable:$true] %s234_s28 }
  0x6a   : > { %s357_s3 = sshll.u32 %s230_s22, 7  ;;  %s1006_s8 = sld [smem:[#allocation14_spill]] }
  0x6b   : > { %217 = vst [vmem:[%s213_s7] sm:$0xff] %v216_v2  ;;  %s219_s6 = scalar_lea.sflag [#allocation4], %s893_s25  ;;  %s527_s15 = scalar_lea.vmem %s908_s28, 128 }
  0x6c   : > { %p528_p0 = scmp.ne.s32.totalorder %s908_s28, %s527_s15  ;;  %p1007_p3 = scmp.ne.s32.totalorder %s993_s29, 0 }
  0x6d   : > { %s657_s16 = smov [#allocation7]  }
  0x6e   : > { %p529_p2 = pnand %p528_p0, %p1007_p3  ;;  %s531_s12 = sshll.u32 %s657_s16, 4  ;;  %s532_s12 = int_to_ptr.vmem [resolvable:$false] %s531_s12 }
  0x6f   : > { %s533_s2 = scalar_lea.vmem %s532_s12, 256  ;;  %p534_p10 = scmp.lt.s32.totalorder %s908_s28, %s532_s12 }
  0x70   : > { %s913_s20 = scalar_lea.hbm %s1006_s8, %s357_s3  ;;  %p530_p5 = pneg %p529_p2 }
  0x71   : > { %p535_p7 = scmp.lt.s32.totalorder %s533_s2, %s527_s15 }
  0x73   : > { %p536_p1 = por %p535_p7, %p534_p10 }
  0x75   : > { %p537_p6 = pnand %p536_p1, %p530_p5 }
  0x77   : > { %540 = shalt.err (!%p537_p6)
}
  0x78   : > { %s541_s25 = scalar_lea.hbm %s913_s20, 128  ;;  %s545_s21 = scalar_lea.hbm %s1006_s8, 512 }
  0x79   : > { %p542_p11 = scmp.ne.s32.totalorder %s913_s20, %s541_s25  ;;  %p546_p4 = scmp.lt.u32.totalorder %s913_s20, %s1006_s8 }
  0x7a   : > { %p547_p12 = scmp.lt.u32.totalorder %s545_s21, %s541_s25  ;;  %p549_p0 = scmp.lt.u32.totalorder %s541_s25, %s913_s20 }
  0x7b   : > { %p543_p8 = pnand %p542_p11, %p1007_p3 }
  0x7c   : > { %p548_p9 = por %p547_p12, %p546_p4 }
  0x7d   : > { %p544_p13 = pneg %p543_p8 }
  0x7e   : > { %p550_p2 = por %p549_p0, %p548_p9 }
  0x80   : > { %p551_p5 = pnand %p550_p2, %p544_p13 }
  0x82   : > { %554 = shalt.err (!%p551_p5)
}
  0x83   : > { %364 = dma.vmem_to_hbm [thread:$0]  (%p1007_p3), %s908_s28, 128, %s913_s20, %s219_s6  }
  0x84 PF: > { %s1008_s7 = sld [smem:[#allocation11_spill]]  ;;  %p378_p10 = scmp.ge.s32.totalorder %s653_s19, 2 }
  0x85   : > { %p1009_p7 = scmp.ne.s32.totalorder %s994_s4, 0 }
  0x87   : > { %p374_p1 = pnand %p378_p10, %p1009_p7 }
  0x8a   : > { %s246_s3 = sand.u32 1, %s1008_s7  }
  0x8b   : > { %s247_s9 = scalar_lea.sflag [#allocation4], %s246_s3 }
  0x8c   : > { %608 = dma.done.wait (!%p374_p1), %s247_s9, 128  }
  0x8d   : > { %610 = vsyncadd (!%p374_p1), %s247_s9, 4294967168  ;;  %s21_s19 = sadd.s32 1, %s653_s19   ;;  %s1010_s29 = sld [smem:[#allocation12_spill]] }
  0x8e   : > { %p18_p6 = scmp.ge.s32.totalorder %s21_s19, 6   ;;  %s1011_s28 = sld [smem:[#allocation13_spill]] }
  0x8f   : > { %s1012_s9 = smov %s617_s10  ;;  %s1013_s10 = smov %s621_s11 }
  0x90   : > { %s1014_s11 = smov %s836_s26  ;;  %s1015_s12 = smov %s629_s13 }
  0x91   : > { %s1016_s13 = smov %s633_s14  ;;  %s1017_s14 = smov %s777_s5 }
  0x92   : > { %s1018_s15 = smov %s645_s17  ;;  %s1019_s16 = smov %s649_s18 }
  0x93   : > { %s1020_s17 = smov %s1010_s29  ;;  %20 = sbr.rel (!%p18_p6) target bundleno = 13 (0xd), region = 86 }
  0x94   : > { %s1021_s18 = smov %s1011_s28 }
  0x9a   :  { %252 = vsyncpa [#allocation3], 1 }
  0x9b   :  { %254 = vsyncpa [#allocation3 + $0x1], 1 }
  0x9c   :  { %255 = vsyncpa [#allocation6], 1 }
  0x9d   :  { %257 = vsyncpa [#allocation6 + $0x1], 1 }
  0x9e   :  { %258 = vsyncpa [#allocation4], 1 }
  0x9f   :  { %260 = vsyncpa [#allocation4 + $0x1], 1 }

</bundles_post_ra>
